<compile_context>
chip_gen: v7x
topology: tpu7x:2x2x1
jax: 0.10.0
libtpu: 0.0.40
codegen_flags: <defaults>
</compile_context>

<pallas_src>
import functools

import jax
import jax.numpy as jnp
from jax.experimental import pallas as pl
from jax.experimental.pallas import tpu as pltpu


def nsp_kernel(x_ref, w_ref, b_ref, o_ref):
    # Hot path: (TB, D) x (2, D)^T contraction with f32 accumulation + bias.
    x = x_ref[...]                                   # (TB, D)
    w = w_ref[...]                                   # (2, D)  lane-dense
    b = b_ref[...]                                   # (1, 2)  f32
    acc = jax.lax.dot_general(
        x, w,
        dimension_numbers=(((1,), (1,)), ((), ())),  # contract over D
        preferred_element_type=jnp.float32,
    )                                                # (TB, 2) f32
    o_ref[...] = (acc + b).astype(o_ref.dtype)


def _pick_tile_b(B, D, itemsize, *, vmem_budget_bytes=8 << 20, tb_cap=1024):
    """Largest multiple-of-8 row tile whose double-buffered X footprint fits budget."""
    tb = (vmem_budget_bytes // (2 * max(D, 1) * itemsize)) // 8 * 8
    tb = int(max(8, min(tb, tb_cap)))
    return tb


@functools.partial(jax.jit, static_argnames=("tb",))
def next_sentence_pred(x, weight, bias, *, tb=None):
    """x: (B, D); weight: (2, D) (PyTorch nn.Linear convention); bias: (2,)."""
    B, D = x.shape
    assert weight.shape == (2, D)
    assert bias.shape == (2,)

    itemsize = jnp.dtype(x.dtype).itemsize
    TB = tb if tb is not None else _pick_tile_b(B, D, itemsize)
    if B <= TB:
        # Single tile: block equals the full batch dim, legal for any B
        # (the (8, 128) rule is waived when the block spans the full axis).
        TB = B
    grid_b = pl.cdiv(B, TB)

    # f32 bias so the in-kernel epilogue is a single VPU add on the accumulator.
    b2d = bias.astype(jnp.float32).reshape(1, 2)

    cost = pl.CostEstimate(
        flops=2 * B * D * 2,
        transcendentals=0,
        bytes_accessed=B * D * itemsize
        + 2 * D * jnp.dtype(weight.dtype).itemsize
        + B * 2 * itemsize
        + 2 * 4,
    )

    return pl.pallas_call(
        nsp_kernel,
        out_shape=jax.ShapeDtypeStruct((B, 2), x.dtype),
        grid_spec=pltpu.PrefetchScalarGridSpec(
            num_scalar_prefetch=0,
            grid=(grid_b,),
            in_specs=[
                pl.BlockSpec((TB, D), lambda i: (i, 0)),   # streamed X tiles
                pl.BlockSpec((2, D), lambda i: (0, 0)),    # resident weight
                pl.BlockSpec((1, 2), lambda i: (0, 0)),    # resident bias
            ],
            out_specs=pl.BlockSpec((TB, 2), lambda i: (i, 0)),
        ),
        compiler_params=pltpu.CompilerParams(
            dimension_semantics=("parallel",),             # independent batch tiles
        ),
        cost_estimate=cost,
    )(x, weight, b2d)


if __name__ == "__main__":
    key = jax.random.PRNGKey(0)
    k_x, k_w, k_b = jax.random.split(key, 3)

    # Small shapes consistent with the module: batch of <cls> vectors (B, D).
    batch, num_inputs = 8, 32
    x = jax.random.normal(k_x, (batch, num_inputs), dtype=jnp.float32)

    # Deterministic parameter init (mimics nn.Linear(num_inputs, 2) shapes).
    bound = 1.0 / jnp.sqrt(num_inputs)
    weight = jax.random.uniform(k_w, (2, num_inputs), dtype=jnp.float32,
                                minval=-bound, maxval=bound)
    bias = jax.random.uniform(k_b, (2,), dtype=jnp.float32,
                              minval=-bound, maxval=bound)

    out = next_sentence_pred(x, weight, bias)
    out = jax.block_until_ready(out)

    # Reference check against plain-JAX linear (X @ W^T + b, PyTorch semantics).
    ref = x @ weight.T + bias
    assert out.shape == (batch, 2)
    assert jnp.allclose(out, ref, atol=1e-5, rtol=1e-5)

    # Second check: exercises multi-tile path with a masked tail tile (B % TB != 0).
    B2, D2 = 300, 256
    x2 = jax.random.normal(k_x, (B2, D2), dtype=jnp.float32)
    w2 = jax.random.uniform(k_w, (2, D2), dtype=jnp.float32, minval=-0.05, maxval=0.05)
    b2 = jax.random.uniform(k_b, (2,), dtype=jnp.float32, minval=-0.05, maxval=0.05)
    out2 = jax.block_until_ready(next_sentence_pred(x2, w2, b2, tb=128))
    ref2 = x2 @ w2.T + b2
    assert jnp.allclose(out2, ref2, atol=1e-4, rtol=1e-4)

    print("KERNEL_OK")
</pallas_src>

<mosaic_0001>
module attributes {stable_mosaic.version = 11 : i64} {
  func.func @nsp_kernel(%arg0: i32, %arg1: memref<8x32xf32, #tpu.memory_space<vmem>>, %arg2: memref<2x32xf32, #tpu.memory_space<vmem>>, %arg3: memref<1x2xf32, #tpu.memory_space<vmem>>, %arg4: memref<8x2xf32, #tpu.memory_space<vmem>>) attributes {dimension_semantics = [#tpu.dimension_semantics<parallel>], iteration_bounds = array<i64: 1>, scalar_prefetch = 0 : i64, scratch_operands = 0 : i64, tpu.core_type = #tpu.core_type<tc>, window_params = [{transform_indices = @transform_0, window_bounds = array<i64: 8, 32>}, {pipeline_mode = #tpu.pipeline_mode<synchronous>, transform_indices = @transform_1, window_bounds = array<i64: 2, 32>}, {pipeline_mode = #tpu.pipeline_mode<synchronous>, transform_indices = @transform_2, window_bounds = array<i64: 1, 2>}, {transform_indices = @transform_3, window_bounds = array<i64: 8, 2>}]} {
    %c0 = arith.constant 0 : index
    %c0_0 = arith.constant 0 : index
    %0 = vector.load %arg1[%c0, %c0_0] : memref<8x32xf32, #tpu.memory_space<vmem>>, vector<8x32xf32>
    %c0_1 = arith.constant 0 : index
    %c0_2 = arith.constant 0 : index
    %1 = vector.load %arg2[%c0_1, %c0_2] : memref<2x32xf32, #tpu.memory_space<vmem>>, vector<2x32xf32>
    %c0_3 = arith.constant 0 : index
    %c0_4 = arith.constant 0 : index
    %2 = vector.load %arg3[%c0_3, %c0_4] : memref<1x2xf32, #tpu.memory_space<vmem>>, vector<1x2xf32>
    %cst = arith.constant dense<0.000000e+00> : vector<8x2xf32>
    %3 = tpu.matmul %0, %1, %cst {dimension_numbers = #tpu.dot_dimension_numbers<[1], [1], [0], [0], [0, 0, 1, 0], [], []>} : vector<8x32xf32>, vector<2x32xf32>, vector<8x2xf32> -> vector<8x2xf32>
    %4 = vector.broadcast %2 : vector<1x2xf32> to vector<8x2xf32>
    %5 = arith.addf %3, %4 : vector<8x2xf32>
    %c0_5 = arith.constant 0 : index
    %c0_6 = arith.constant 0 : index
    %6 = vector.load %arg4[%c0_5, %c0_6] : memref<8x2xf32, #tpu.memory_space<vmem>>, vector<8x2xf32>
    tpu.vector_store %arg4[%c0_5, %c0_6], %5 {strides = array<i32>} : memref<8x2xf32, #tpu.memory_space<vmem>>, vector<8x2xf32>,
    return
  }
  func.func @transform_0(%arg0: i32) -> (i32, i32) {
    %c0_i32 = arith.constant 0 : i32
    %c0_i32_0 = arith.constant 0 : i32
    return %arg0, %c0_i32 : i32, i32
  }
  func.func @transform_1(%arg0: i32) -> (i32, i32) {
    %c0_i32 = arith.constant 0 : i32
    %c0_i32_0 = arith.constant 0 : i32
    %c0_i32_1 = arith.constant 0 : i32
    return %c0_i32, %c0_i32_0 : i32, i32
  }
  func.func @transform_2(%arg0: i32) -> (i32, i32) {
    %c0_i32 = arith.constant 0 : i32
    %c0_i32_0 = arith.constant 0 : i32
    %c0_i32_1 = arith.constant 0 : i32
    return %c0_i32, %c0_i32_0 : i32, i32
  }
  func.func @transform_3(%arg0: i32) -> (i32, i32) {
    %c0_i32 = arith.constant 0 : i32
    %c0_i32_0 = arith.constant 0 : i32
    return %arg0, %c0_i32 : i32, i32
  }
}

</mosaic_0001>

<bundles_post_ra>
// kernel: next_sentence_pred.1
= control target key start
LH: loop header
LB: loop body
LE: loop exit
PB: predicated region body
PF: predicated region fallthrough
CT: control target
= control target key end

     0   :  { %8 = vsyncpa [#allocation3], 0  ;;  %s156_s12 = smov [#allocation2]   ;;  %s200_s0 = inlined_call_operand.hbm [shape: f32[8,32], index: 0, kind: input, shape index: {}]   ;;  %s201_s1 = inlined_call_operand.vmem [shape: f32[2,32], index: 1, kind: input, shape index: {}]   ;;  %s202_s2 = inlined_call_operand.vmem [shape: f32[1,2], index: 2, kind: input, shape index: {}]   ;;  %s203_s3 = inlined_call_operand.vmem [shape: f32[8,2], index: 3, kind: output, shape index: {}]  }
   0x1   :  { %s15_s13 = sshll.u32 %s156_s12, 4  ;;  %s132_s16 = scalar_lea.hbm %s200_s0, 128  ;;  %s16_s13 = int_to_ptr.vmem [resolvable:$true] %s15_s13 }
   0x2   :  { %p133_p0 = scmp.ne.s32.totalorder %s200_s0, %s132_s16  ;;  %p136_p1 = scmp.lt.u32.totalorder %s132_s16, %s200_s0 }
   0x4   :  { %p138_p2 = pnand %p136_p1, %p133_p0 }
   0x6   :  { %141 = shalt.err (!%p138_p2)
}
   0x7   :  { %s142_s21 = scalar_lea.vmem %s16_s13, 128  ;;  %p147_p4 = scmp.lt.s32.totalorder %s16_s13, %s16_s13 }
   0x8   :  { %p143_p3 = scmp.ne.s32.totalorder %s16_s13, %s142_s21  ;;  %p148_p5 = scmp.lt.s32.totalorder %s142_s21, %s142_s21 }
   0xa   :  { %p149_p6 = por %p148_p5, %p147_p4 }
   0xc   :  { %p150_p7 = pnand %p149_p6, %p143_p3 }
   0xe   :  { %153 = shalt.err (!%p150_p7)
}
   0xf   :  { %18 = dma.hbm_to_vmem [thread:$0]  %s200_s0, 128, %s16_s13, [#allocation3]  }
  0x10   :  { %154 = dma.done.wait [#allocation3], 128  }
  0x11   :  { %155 = vsyncadd [#allocation3], 4294967168  ;;  %v157_v0 = vmov 0.0   ;;  %vm158_vm0 = vmmov 0   ;;  %vm35_vm1 = vcmask 261120   ;;  %v26_v2 = vld [vmem:[#allocation2] sm:$0xff] }
  0x12   :  { %124 = vmatprep.subr.mxu0 %v157_v0  ;;  %126 = vmatprep.mubr.msk.f32.mxu0 %vm158_vm0, %v157_v0  ;;  %v27_v1 = vld [vmem:[%s201_s1] sm:$0x3]  ;;  %vm112_vm2 = vcmask 15360  }
  0x13   :  { %125 = vmatpush3.xpose.msk.msra.mxu0 %vm35_vm1, %v27_v1  ;;  %v119_v3 = vld [vmem:[%s202_s2] ss:$0 sm:$0xff] }
  0x16   :  { %127 = vmatmul.mubr.msk.f32.vlgmr.msra.gmra.mrb[0].mxu0 %vm35_vm1, %v26_v2 }
  0xe9   :  { %v108_v4 = vpop.f32.mrb[0].mxu0 }
  0xea   :  { %v109_v5 = vadd.f32 %v119_v3, %v108_v4  ;;  %v128_v6 = vpop.f32.mrb[1].mxu0 }
  0xec   :  { %113 = vst.msk [vmem:[%s203_s3] sm:$0xff] %vm112_vm2, %v109_v5 }
  0xed   :  { %118 = vsyncpa [#allocation3], 1 }

</bundles_post_ra>
